<compile_context>
chip_gen: v5e
topology: v5e:2x2
jax: 0.10.0
libtpu: 0.0.40
codegen_flags: <defaults>
</compile_context>

<pallas_src>
import functools

import jax
import jax.numpy as jnp
from jax.experimental import pallas as pl
from jax.experimental.pallas import tpu as pltpu


# ----------------------------------------------------------------------------
# Kernel A: turbulent kinetic energy  tke = 0.5 * sum_c u_c^2
# ----------------------------------------------------------------------------
def tke_kernel(u_ref, o_ref):
    C = u_ref.shape[1]
    acc = None
    for c in range(C):                                   # unrolled (C is tiny)
        uc = u_ref[:, c, :].astype(jnp.float32)          # (B, TS)
        acc = uc * uc if acc is None else acc + uc * uc
    o_ref[...] = 0.5 * acc


# ----------------------------------------------------------------------------
# Kernel B: one wavenumber shell per grid step (K axis is "parallel").
# Trilinear interpolation of log|FFT|^2 on the Lebedev sphere, exp,
# quadrature-weighted sum, scaled by 4*pi*k^2.
# ----------------------------------------------------------------------------
def spectrum_kernel(k_smem, logp_ref, p_ref, w_ref, out_ref, *, X, Y, Z, n):
    i = pl.program_id(0)
    kk = k_smem[i]                                       # f32 wavenumber

    def axis_onehot(coord_row, dim):
        center = dim // 2                                # fftshift center
        q = kk * coord_row + center                      # (1, n) query coords
        f0 = jnp.floor(q).astype(jnp.int32)
        i0 = jnp.clip(f0, 0, dim - 1)
        i1 = jnp.clip(f0 + 1, 0, dim - 1)
        wgt = q - i0.astype(jnp.float32)                 # torch: points - clamped p0
        # fold fftshift into the gather: shifted[j] == unshifted[(j - dim//2) % dim]
        j0 = jnp.remainder(i0 + (dim - center), dim)
        j1 = jnp.remainder(i1 + (dim - center), dim)
        iota = jax.lax.broadcasted_iota(jnp.int32, (dim, n), 0)
        return (jnp.where(iota == j0, 1.0 - wgt, 0.0)
                + jnp.where(iota == j1, wgt, 0.0))       # (dim, n)

    sx = axis_onehot(p_ref[0:1, :], X)                   # (X, n)
    sy = axis_onehot(p_ref[1:2, :], Y)                   # (Y, n)
    sz = axis_onehot(p_ref[2:3, :], Z)                   # (Z, n)

    # Separable trilinear weights -> dense (G, n).  Only one multiply touches
    # the full-size array; the reshape keeps the lane dim (n) unchanged.
    sxy = sx[:, None, None, :] * sy[None, :, None, :]            # (X, Y, 1, n)
    st = (sxy * sz[None, None, :, :]).reshape(X * Y * Z, n)      # (G, n)

    # Trilinear interpolation of log power for all batches on the MXU.
    logv = jnp.dot(logp_ref[...], st,
                   preferred_element_type=jnp.float32)           # (B, n)
    interp = jnp.exp(logv) * w_ref[...]                          # (B, n) * (1, n)
    scale = 4.0 * jnp.pi * kk * kk
    e_row = scale * jnp.sum(interp, axis=1, keepdims=True)       # (B, 1)
    out_ref[...] = e_row.reshape(1, e_row.shape[0], 1)           # (1, B, 1)


# ----------------------------------------------------------------------------
# Wrapper
# ----------------------------------------------------------------------------
def turbulent_kinetic_energy_spectrum(u, k, p, w):
    B, C, X, Y, Z = u.shape
    G = X * Y * Z
    K = k.shape[0]
    n = p.shape[0]

    # ---- kinetic energy (Pallas, tiled over the flattened spatial dim) ----
    TS = 2048 if (G % 2048 == 0 and G > 2048) else G
    tke = pl.pallas_call(
        tke_kernel,
        out_shape=jax.ShapeDtypeStruct((B, G), jnp.float32),
        grid=(G // TS,),
        in_specs=[pl.BlockSpec((B, C, TS), lambda s: (0, 0, s))],
        out_specs=pl.BlockSpec((B, TS), lambda s: (0, s)),
        compiler_params=pltpu.CompilerParams(dimension_semantics=("parallel",)),
    )(u.reshape(B, C, G))

    # TODO(synk): 3D FFT has no Pallas equivalent; computed with jnp.fft glue.
    f = jnp.fft.fftn(tke.reshape(B, X, Y, Z), axes=(-3, -2, -1))
    power = jnp.real(f) ** 2 + jnp.imag(f) ** 2
    # Log power of the *unshifted* spectrum (fftshift folded into kernel index
    # math).  Tiny floor keeps -inf out of the dense MXU contraction.
    logp = jnp.log(jnp.maximum(power, 1e-30)).reshape(B, G).astype(jnp.float32)

    p2 = p.astype(jnp.float32).T                         # (3, n)  lane-dense
    qw = w.astype(jnp.float32).reshape(1, n)             # (1, n)  lane-dense

    kern = functools.partial(spectrum_kernel, X=X, Y=Y, Z=Z, n=n)

    # TODO(synk): for production grids (>=64^3) the G axis of logp/st must be
    # tiled (inner "arbitrary" grid axis accumulating the partial dot); at the
    # toy sizes used here everything stays resident in VMEM.
    E = pl.pallas_call(
        kern,
        out_shape=jax.ShapeDtypeStruct((K, B, 1), jnp.float32),
        grid=(K,),
        in_specs=[
            pl.BlockSpec(memory_space=pltpu.SMEM),       # k values (scalars)
            pl.BlockSpec((B, G), lambda i: (0, 0)),      # log power, resident
            pl.BlockSpec((3, n), lambda i: (0, 0)),      # sphere points
            pl.BlockSpec((1, n), lambda i: (0, 0)),      # quadrature weights
        ],
        out_specs=pl.BlockSpec((1, B, 1), lambda i: (i, 0, 0)),
        compiler_params=pltpu.CompilerParams(dimension_semantics=("parallel",)),
    )(k.astype(jnp.float32), logp, p2, qw)

    return E[:, :, 0].T                                  # (B, K)


# ----------------------------------------------------------------------------
# Pure-JAX reference (mirrors the PyTorch module) for correctness checking.
# ----------------------------------------------------------------------------
def interp3_ref(grid, points):
    p0 = jnp.floor(points).astype(jnp.int32)
    p1 = p0 + 1
    upper = jnp.array(grid.shape[-3:], jnp.int32) - 1
    p0c = jnp.clip(p0, 0, upper)
    p1c = jnp.clip(p1, 0, upper)
    x0, y0, z0 = p0c[..., 0], p0c[..., 1], p0c[..., 2]
    x1, y1, z1 = p1c[..., 0], p1c[..., 1], p1c[..., 2]
    wdt = points - p0c.astype(points.dtype)
    wx, wy, wz = wdt[..., 0], wdt[..., 1], wdt[..., 2]

    def gat(ix, iy, iz):
        return grid[..., ix, iy, iz]

    return ((1 - wx) * (1 - wy) * (1 - wz) * gat(x0, y0, z0)
            + (1 - wx) * (1 - wy) * wz * gat(x0, y0, z1)
            + (1 - wx) * wy * (1 - wz) * gat(x0, y1, z0)
            + (1 - wx) * wy * wz * gat(x0, y1, z1)
            + wx * (1 - wy) * (1 - wz) * gat(x1, y0, z0)
            + wx * (1 - wy) * wz * gat(x1, y0, z1)
            + wx * wy * (1 - wz) * gat(x1, y1, z0)
            + wx * wy * wz * gat(x1, y1, z1))


def forward_ref(u, k, p, w):
    tke = 0.5 * jnp.sum(u ** 2, axis=-4)
    f = jnp.fft.fftn(tke, axes=(-3, -2, -1))
    f = jnp.fft.fftshift(f, axes=(-3, -2, -1))
    center = jnp.array([s // 2 for s in u.shape[-3:]], dtype=k.dtype)
    p_query = k[:, None, None] * p + center
    interp = jnp.exp(interp3_ref(jnp.log(jnp.abs(f) ** 2), p_query)).astype(jnp.float32)
    return jnp.matmul(interp, w) * (4.0 * jnp.pi * k ** 2)


# ----------------------------------------------------------------------------
if __name__ == "__main__":
    B, C, X, Y, Z = 2, 3, 16, 16, 16   # batch, velocity components, spatial grid
    K = 8                              # number of wavenumber shells
    n = 128                            # quadrature points on the sphere

    key = jax.random.PRNGKey(0)
    u = jax.random.normal(key, (B, C, X, Y, Z), dtype=jnp.float32)
    k = jnp.linspace(0.5, 6.5, K).astype(jnp.float32)

    # Deterministic spherical quadrature (stand-in for the Lebedev pickle table)
    idx = jnp.arange(n, dtype=jnp.float32)
    phi = jnp.arccos(1.0 - 2.0 * (idx + 0.5) / n)
    theta = jnp.pi * (1.0 + 5.0 ** 0.5) * idx
    p = jnp.stack([jnp.sin(phi) * jnp.cos(theta),
                   jnp.sin(phi) * jnp.sin(theta),
                   jnp.cos(phi)], axis=1).astype(jnp.float32)   # (n, 3)
    w = jnp.full((n,), 1.0 / n, dtype=jnp.float32)              # sums to 1

    E = turbulent_kinetic_energy_spectrum(u, k, p, w)
    E = jax.block_until_ready(E)

    E_ref = forward_ref(u, k, p, w)
    assert E.shape == (B, K), E.shape
    if not bool(jnp.allclose(E, E_ref, rtol=5e-3, atol=1e-3)):
        max_rel = float(jnp.max(jnp.abs(E - E_ref) / (jnp.abs(E_ref) + 1e-12)))
        raise SystemExit(f"mismatch vs reference, max rel err = {max_rel:.3e}")

    print("KERNEL_OK")
</pallas_src>

<mosaic_0001>
module attributes {stable_mosaic.version = 11 : i64} {
  func.func @tke_kernel(%arg0: i32, %arg1: memref<2x3x2048xf32, #tpu.memory_space<vmem>>, %arg2: memref<2x2048xf32, #tpu.memory_space<vmem>>) attributes {dimension_semantics = [#tpu.dimension_semantics<parallel>], iteration_bounds = array<i64: 2>, scalar_prefetch = 0 : i64, scratch_operands = 0 : i64, tpu.core_type = #tpu.core_type<tc>, window_params = [{transform_indices = @transform_0, window_bounds = array<i64: 2, 3, 2048>}, {transform_indices = @transform_1, window_bounds = array<i64: 2, 2048>}]} {
    %c0 = arith.constant 0 : index
    %c0_0 = arith.constant 0 : index
    %c0_1 = arith.constant 0 : index
    %0 = vector.load %arg1[%c0, %c0_0, %c0_1] : memref<2x3x2048xf32, #tpu.memory_space<vmem>>, vector<2x1x2048xf32>
    %1 = vector.shape_cast %0 : vector<2x1x2048xf32> to vector<2x2048xf32>
    %2 = arith.mulf %1, %1 : vector<2x2048xf32>
    %c0_2 = arith.constant 0 : index
    %c1 = arith.constant 1 : index
    %c0_3 = arith.constant 0 : index
    %3 = vector.load %arg1[%c0_2, %c1, %c0_3] : memref<2x3x2048xf32, #tpu.memory_space<vmem>>, vector<2x1x2048xf32>
    %4 = vector.shape_cast %3 : vector<2x1x2048xf32> to vector<2x2048xf32>
    %5 = arith.mulf %4, %4 : vector<2x2048xf32>
    %6 = arith.addf %2, %5 : vector<2x2048xf32>
    %c0_4 = arith.constant 0 : index
    %c2 = arith.constant 2 : index
    %c0_5 = arith.constant 0 : index
    %7 = vector.load %arg1[%c0_4, %c2, %c0_5] : memref<2x3x2048xf32, #tpu.memory_space<vmem>>, vector<2x1x2048xf32>
    %8 = vector.shape_cast %7 : vector<2x1x2048xf32> to vector<2x2048xf32>
    %9 = arith.mulf %8, %8 : vector<2x2048xf32>
    %10 = arith.addf %6, %9 : vector<2x2048xf32>
    %cst = arith.constant 5.000000e-01 : f32
    %11 = vector.broadcast %cst : f32 to vector<2x2048xf32>
    %12 = arith.mulf %11, %10 : vector<2x2048xf32>
    %c0_6 = arith.constant 0 : index
    %c0_7 = arith.constant 0 : index
    %13 = vector.load %arg2[%c0_6, %c0_7] : memref<2x2048xf32, #tpu.memory_space<vmem>>, vector<2x2048xf32>
    tpu.vector_store %arg2[%c0_6, %c0_7], %12 {strides = array<i32>} : memref<2x2048xf32, #tpu.memory_space<vmem>>, vector<2x2048xf32>,
    return
  }
  func.func @transform_0(%arg0: i32) -> (i32, i32, i32) {
    %c0_i32 = arith.constant 0 : i32
    %c0_i32_0 = arith.constant 0 : i32
    %c0_i32_1 = arith.constant 0 : i32
    return %c0_i32, %c0_i32_0, %arg0 : i32, i32, i32
  }
  func.func @transform_1(%arg0: i32) -> (i32, i32) {
    %c0_i32 = arith.constant 0 : i32
    %c0_i32_0 = arith.constant 0 : i32
    return %c0_i32, %arg0 : i32, i32
  }
}

</mosaic_0001>

<bundles_post_ra>
// kernel: tpu_custom_call.1
= control target key start
LH: loop header
LB: loop body
LE: loop exit
PB: predicated region body
PF: predicated region fallthrough
CT: control target
= control target key end

     0   :  { %6 = vsyncpa [#allocation4], 0  ;;  %s572_s0 = inlined_call_operand.vmem [shape: f32[2,3,4096], index: 0, kind: input, shape index: {}]   ;;  %s573_s1 = inlined_call_operand.hbm [shape: f32[2,4096], index: 1, kind: output, shape index: {}]  }
   0x1   :  { %8 = vsyncpa [#allocation4 + $0x1], 0  ;;  %s459_s6 = smov 0   ;;  %s461_s7 = smov 0  }
   0x2   :  { %s463_s8 = smov 0   ;;  %s465_s9 = smov 0  }
   0x3 LB: > { %s318_s10 = sadd.s32 4294967295, %s447_s9   ;;  %s319_s11 = sadd.s32 4294967294, %s447_s9   ;;  %s447_s9 = sphi %s465_s9, %s579_s9   ;;  %s443_s8 = sphi %s463_s8, %s578_s8   ;;  %s439_s7 = sphi %s461_s7, %s577_s7   ;;  %s435_s6 = sphi %s459_s6, %s576_s6  }
   0x4   : > { %s482_s12 = sadd.s32 1, %s447_s9   ;;  %s21_s13 = sadd.s32 1, %s443_s8 }
   0x5   : > { %s18_s14 = ssub.s32 %s447_s9, %s482_s12  ;;  %p28_p0 = scmp.ne.s32.totalorder %s443_s8, %s439_s7 }
   0x6   : > { %p19_p1 = scmp.eq.s32.totalorder %s18_s14, 0  ;;  %p29_p2 = scmp.eq.s32.totalorder %s447_s9, 0 }
   0x7   : > { %p58_p3 = scmp.eq.s32.totalorder %s318_s10, 1  ;;  %p63_p4 = scmp.ne.s32.totalorder %s439_s7, %s435_s6 }
   0x8   : > { %s495_s15 = scalar_select %p19_p1, %s443_s8, %s21_s13  }
   0x9   : > { %p30_p5 = por %p29_p2, %p28_p0  ;;  %p497_p6 = por %p58_p3, %p28_p0 }
   0xa   : > { %p64_p7 = scmp.eq.s32.totalorder %s319_s11, 1  ;;  %p321_p9 = scmp.ge.s32.totalorder %s447_s9, 2 }
   0xc   : > { %p501_p8 = por %p64_p7, %p63_p4  ;;  %80 = sbr.rel (%p321_p9) target bundleno = 37 (0x25), region = 16 }
  0x11   : > { %83 = sbr.rel (!%p30_p5) target bundleno = 37 (0x25), region = 20  ;;  %s85_s18 = sand.u32 (%p30_p5), 1, %s443_s8  }
  0x12   : > { %s344_s19 = sshll.u32 (%p30_p5), %s447_s9, 6  ;;  %s322_s20 = sshll.u32 (%p30_p5), %s85_s18, 7 }
  0x13   : > { %s513_s23 = scalar_lea.vmem (%p30_p5), %s572_s0, %s344_s19  ;;  %s87_s24 = scalar_lea.vmem (%p30_p5), [#allocation2], %s322_s20 }
  0x14   : > { %v103_v0 = vld [vmem:[%s513_s23] sm:$0xff] (%p30_p5)  ;;  %v105_v1 = vld [vmem:[%s513_s23 + $0x8] sm:$0xff] (%p30_p5)  ;;  %v107_v2 = vld [vmem:[%s513_s23 + $0x10] sm:$0xff] (%p30_p5) }
  0x15   : > { %104 = vst [vmem:[%s87_s24] sm:$0xff] (%p30_p5), %v103_v0  ;;  %v109_v3 = vld [vmem:[%s513_s23 + $0x18] sm:$0xff] (%p30_p5)  ;;  %v111_v4 = vld [vmem:[%s513_s23 + $0x20] sm:$0xff] (%p30_p5)  ;;  %v113_v5 = vld [vmem:[%s513_s23 + $0x28] sm:$0xff] (%p30_p5) }
  0x16   : > { %106 = vst [vmem:[%s87_s24 + $0x8] sm:$0xff] %v105_v1  ;;  %v115_v6 = vld [vmem:[%s513_s23 + $0x30] sm:$0xff]  ;;  %v117_v7 = vld [vmem:[%s513_s23 + $0x38] sm:$0xff]  ;;  %v119_v8 = vld [vmem:[%s513_s23 + $0x80] sm:$0xff] }
  0x17   : > { %108 = vst [vmem:[%s87_s24 + $0x10] sm:$0xff] %v107_v2  ;;  %v121_v9 = vld [vmem:[%s513_s23 + $0x88] sm:$0xff]  ;;  %v123_v10 = vld [vmem:[%s513_s23 + $0x90] sm:$0xff]  ;;  %v125_v11 = vld [vmem:[%s513_s23 + $0x98] sm:$0xff] }
  0x18   : > { %110 = vst [vmem:[%s87_s24 + $0x18] sm:$0xff] %v109_v3  ;;  %v127_v12 = vld [vmem:[%s513_s23 + $0xa0] sm:$0xff]  ;;  %v129_v13 = vld [vmem:[%s513_s23 + $0xa8] sm:$0xff]  ;;  %v131_v14 = vld [vmem:[%s513_s23 + $0xb0] sm:$0xff] }
  0x19   : > { %112 = vst [vmem:[%s87_s24 + $0x20] sm:$0xff] %v111_v4  ;;  %v133_v15 = vld [vmem:[%s513_s23 + $0xb8] sm:$0xff] }
  0x1a   : > { %114 = vst [vmem:[%s87_s24 + $0x28] sm:$0xff] %v113_v5 }
  0x1b   : > { %116 = vst [vmem:[%s87_s24 + $0x30] sm:$0xff] %v115_v6 }
  0x1c   : > { %118 = vst [vmem:[%s87_s24 + $0x38] sm:$0xff] %v117_v7 }
  0x1d   : > { %120 = vst [vmem:[%s87_s24 + $0x40] sm:$0xff] %v119_v8 }
  0x1e   : > { %122 = vst [vmem:[%s87_s24 + $0x48] sm:$0xff] %v121_v9 }
  0x1f   : > { %124 = vst [vmem:[%s87_s24 + $0x50] sm:$0xff] %v123_v10 }
  0x20   : > { %126 = vst [vmem:[%s87_s24 + $0x58] sm:$0xff] %v125_v11 }
  0x21   : > { %128 = vst [vmem:[%s87_s24 + $0x60] sm:$0xff] %v127_v12 }
  0x22   : > { %130 = vst [vmem:[%s87_s24 + $0x68] sm:$0xff] %v129_v13 }
  0x23   : > { %132 = vst [vmem:[%s87_s24 + $0x70] sm:$0xff] %v131_v14 }
  0x24   : > { %134 = vst [vmem:[%s87_s24 + $0x78] sm:$0xff] %v133_v15 }
  0x25 PF: > { %p325_p10 = scmp.ge.s32.totalorder %s447_s9, 1  ;;  %p139_p11 = scmp.lt.s32.totalorder %s447_s9, 3 }
  0x27   : > { %p140_p12 = pnand %p325_p10, %p139_p11 }
  0x28   : > { %s534_s25 = sand.u32 (!%p140_p12), 1, %s439_s7   ;;  %s345_s29 = sshll.u32 (!%p140_p12), %s318_s10, 5 }
  0x29   : > { %143 = sbr.rel (%p140_p12) target bundleno = 70 (0x46), region = 43  ;;  %s326_s26 = sshll.u32 (!%p140_p12), %s534_s25, 7 }
  0x2a   : > { %s148_s27 = scalar_lea.vmem (!%p140_p12), [#allocation2], %s326_s26  ;;  %s327_s28 = sshll.u32 (!%p140_p12), %s534_s25, 5 }
  0x2b   : > { %s249_s3 = scalar_lea.hbm (!%p140_p12), %s573_s1, %s345_s29  ;;  %s164_s4 = scalar_lea.vmem (!%p140_p12), [#allocation3], %s327_s28 }
  0x2c   : > { %s251_s5 = sshll.u32 (!%p140_p12), %s164_s4, 4  ;;  %s253_s11 = sshll.u32 (!%p140_p12), %s249_s3, 4  ;;  %s252_s5 = int_to_ptr.vmem [resolvable:$true] %s251_s5  ;;  %s254_s11 = int_to_ptr.hbm [resolvable:$true] %s253_s11 }
  0x2d   : > { %s238_s10 = scalar_lea.sflag (!%p140_p12), [#allocation4], %s534_s25  ;;  %s399_s13 = sshra.s32 (!%p140_p12), %s254_s11, 4  ;;  %s400_s13 = int_to_ptr.hbm [resolvable:$true] %s399_s13 }
  0x2e   : > { %v167_v16 = vld [vmem:[%s148_s27] ss:$4 sm:$0xff]  ;;  %v331_v17 = vld [vmem:[%s148_s27 + $0x1] ss:$4 sm:$0xff]  ;;  %v335_v18 = vld [vmem:[%s148_s27 + $0x2] ss:$4 sm:$0xff]  ;;  %p406_p2 = scmp.lt.s32.totalorder %s400_s13, %s573_s1 }
  0x2f   : > { %v174_v19 = vmul.f32 %v167_v16, %v167_v16  ;;  %v186_v20 = vmul.f32 %v331_v17, %v331_v17  ;;  %v202_v21 = vmul.f32 %v335_v18, %v335_v18  ;;  %v329_v22 = vld [vmem:[%s148_s27 + $0x40] ss:$4 sm:$0xff]  ;;  %v333_v23 = vld [vmem:[%s148_s27 + $0x41] ss:$4 sm:$0xff]  ;;  %v337_v24 = vld [vmem:[%s148_s27 + $0x42] ss:$4 sm:$0xff] }
  0x30   : > { %v176_v25 = vmul.f32 %v329_v22, %v329_v22  ;;  %v188_v26 = vmul.f32 %v333_v23, %v333_v23  ;;  %v204_v27 = vmul.f32 %v337_v24, %v337_v24  ;;  %v328_v28 = vld [vmem:[%s148_s27 + $0x20] ss:$4 sm:$0xff]  ;;  %v332_v29 = vld [vmem:[%s148_s27 + $0x21] ss:$4 sm:$0xff]  ;;  %v336_v30 = vld [vmem:[%s148_s27 + $0x22] ss:$4 sm:$0xff] }
  0x31   : > { %v190_v31 = vadd.f32 %v186_v20, %v174_v19  ;;  %v175_v32 = vmul.f32 %v328_v28, %v328_v28  ;;  %v187_v33 = vmul.f32 %v332_v29, %v332_v29  ;;  %v203_v34 = vmul.f32 %v336_v30, %v336_v30  ;;  %v330_v35 = vld [vmem:[%s148_s27 + $0x60] ss:$4 sm:$0xff]  ;;  %v334_v36 = vld [vmem:[%s148_s27 + $0x61] ss:$4 sm:$0xff]  ;;  %v338_v37 = vld [vmem:[%s148_s27 + $0x62] ss:$4 sm:$0xff] }
  0x32   : > { %v192_v38 = vadd.f32 %v188_v26, %v176_v25  ;;  %v177_v39 = vmul.f32 %v330_v35, %v330_v35  ;;  %v189_v40 = vmul.f32 %v334_v36, %v334_v36  ;;  %v205_v41 = vmul.f32 %v338_v37, %v338_v37  ;;  %s401_s14 = scalar_lea.hbm %s400_s13, 32  ;;  %s405_s20 = scalar_lea.hbm %s573_s1, 64 }
  0x33   : > { %v206_v42 = vadd.f32 %v202_v21, %v190_v31  ;;  %v191_v43 = vadd.f32 %v187_v33, %v175_v32  ;;  %p402_p13 = scmp.ne.s32.totalorder %s400_s13, %s401_s14  ;;  %p407_p3 = scmp.lt.s32.totalorder %s405_s20, %s401_s14 }
  0x34   : > { %v208_v44 = vadd.f32 %v204_v27, %v192_v38  ;;  %v193_v45 = vadd.f32 %v189_v40, %v177_v39 }
  0x35   : > { %v210_v46 = vmul.f32 0.5, %v206_v42  ;;  %v207_v47 = vadd.f32 %v203_v34, %v191_v43  ;;  %p403_p0 = pnand %p402_p13, %p497_p6  ;;  %p408_p4 = por %p407_p3, %p406_p2 }
  0x36   : > { %v212_v48 = vmul.f32 0.5, %v208_v44  ;;  %v209_v49 = vadd.f32 %v205_v41, %v193_v45 }
  0x37   : > { %218 = vst [vmem:[#allocation1] ss:$2 sm:$0xff] %v210_v46  ;;  %v211_v50 = vmul.f32 0.5, %v207_v47  ;;  %p404_p1 = pneg %p403_p0 }
  0x38   : > { %220 = vst [vmem:[#allocation1 + $0x1] ss:$2 sm:$0xff] %v212_v48  ;;  %v213_v51 = vmul.f32 0.5, %v209_v49 }
  0x39   : > { %222 = vst [vmem:[#allocation1 + $0x10] ss:$2 sm:$0xff] %v211_v50  ;;  %p409_p5 = pnand %p408_p4, %p404_p1 }
  0x3a   : > { %224 = vst [vmem:[#allocation1 + $0x11] ss:$2 sm:$0xff] %v213_v51 }
  0x3f   : > { %v225_v52 = vld [vmem:[#allocation1] sm:$0xff]  ;;  %v226_v53 = vld [vmem:[#allocation1 + $0x8] sm:$0xff] }
  0x40   : > { %233 = vst [vmem:[%s164_s4] sm:$0xff] %v225_v52 }
  0x41   : > { %234 = vst [vmem:[%s164_s4 + $0x8] sm:$0xff] %v226_v53  ;;  %v227_v54 = vld [vmem:[#allocation1 + $0x10] sm:$0xff]  ;;  %v228_v55 = vld [vmem:[#allocation1 + $0x18] sm:$0xff] }
  0x42   : > { %235 = vst [vmem:[%s164_s4 + $0x10] sm:$0xff] %v227_v54 }
  0x43   : > { %236 = vst [vmem:[%s164_s4 + $0x18] sm:$0xff] %v228_v55 }
  0x44   : > { %412 = shalt.err (!%p409_p5)
}
  0x45   : > { %346 = dma.vmem_to_hbm [thread:$0]  (%p497_p6), %s252_s5, 512, %s254_s11, %s238_s10  }
  0x46 PF: > { %s265_s23 = sand.u32 1, %s435_s6   ;;  %p349_p7 = pnand %p321_p9, %p501_p8 }
  0x47   : > { %s266_s24 = scalar_lea.sflag [#allocation4], %s265_s23 }
  0x48   : > { %p350_p10 = pneg %p349_p7 }
  0x4a   : > { %430 = dma.done.wait (%p350_p10), %s266_s24, 512  }
  0x4b   : > { %432 = vsyncadd (%p350_p10), %s266_s24, 4294966784  ;;  %p11_p11 = scmp.ge.s32.totalorder %s482_s12, 4   ;;  %s576_s6 = smov %s439_s7 }
  0x4c   : > { %s577_s7 = smov %s443_s8  ;;  %s578_s8 = smov %s495_s15 }
  0x4d   : > { %s579_s9 = smov %s482_s12  ;;  %13 = sbr.rel (!%p11_p11) target bundleno = 3 (0x3), region = 101 }
  0x52   :  { %272 = vsyncpa [#allocation4], 1 }
  0x53   :  { %274 = vsyncpa [#allocation4 + $0x1], 1 }

</bundles_post_ra>
